<compile_context>
chip_gen: v5e
topology: v5e:2x2
jax: 0.10.0
libtpu: 0.0.40
codegen_flags: <defaults>
</compile_context>

<pallas_src>
import jax
import jax.numpy as jnp
from jax.experimental import pallas as pl
from jax.experimental.pallas import tpu as pltpu


_ROW_TILE = 512   # rows (T*B samples) per grid step; multiple of 8 sublanes
_LANE = 128       # lane width for padding hidden/output feature dims


def _round_up(x, m):
    return (x + m - 1) // m * m


def _make_qmlp_kernel(n_layers):
    """Fused MLP kernel. Layer 0 consumes obs/act/z separately (fused concat)."""

    def kernel(*refs):
        obs_ref, act_ref, z_ref = refs[0], refs[1], refs[2]
        o_ref = refs[-1]
        p = refs[3:-1]  # W0_obs, W0_act, W0_z, b0, W1, b1, ..., W_{L-1}, b_{L-1}

        # Layer 0: h = obs @ W0_obs + act @ W0_act + z @ W0_z + b0
        h = (jnp.dot(obs_ref[...], p[0][...], preferred_element_type=jnp.float32)
             + jnp.dot(act_ref[...], p[1][...], preferred_element_type=jnp.float32)
             + jnp.dot(z_ref[...], p[2][...], preferred_element_type=jnp.float32)
             + p[3][...])
        if n_layers > 1:
            h = jnp.maximum(h, 0.0)

        k = 4
        for i in range(1, n_layers):
            h = jnp.dot(h, p[k][...], preferred_element_type=jnp.float32) + p[k + 1][...]
            if i < n_layers - 1:
                h = jnp.maximum(h, 0.0)
            k += 2

        # Real Q value lives in lane 0 of the zero-padded final layer.
        o_ref[...] = h[:, 0:1].astype(o_ref.dtype)

    return kernel


def latent_q_of_mu_mlp_forward(observation, prev_action, prev_reward, action,
                               latent_z, params, *, obs_ndim):
    """Forward of rlpyt LatentQofMuMlpModel with one fused Pallas TPU kernel.

    observation: (..., *obs_shape) with 0/1/2 leading dims (rlpyt convention)
    action:      (..., action_size) with the same leading dims
    latent_z:    (B, latent_size)
    params:      list of (W, b); W is (fan_in, fan_out), b is (fan_out,)
                 with fan_in of layer 0 == obs_dim + action_size + latent_size
                 and fan_out of the last layer == 1.
    """
    del prev_action, prev_reward  # unused by the reference module's forward

    lead_shape = observation.shape[:observation.ndim - obs_ndim]
    lead_dim = len(lead_shape)
    if lead_dim == 2:
        T, B = lead_shape
    elif lead_dim == 1:
        T, B = 1, lead_shape[0]
    else:
        T, B = 1, 1
    assert B == latent_z.shape[0], "batch size mismatch with latent_z"

    obs_flat = observation.reshape(T * B, -1).astype(jnp.float32)
    act_flat = action.reshape(T * B, -1).astype(jnp.float32)
    z_flat = latent_z.reshape(B, -1).astype(jnp.float32)
    z_tiled = jnp.tile(z_flat, (T, 1))   # only the tiny latent gets replicated

    obs_dim = obs_flat.shape[1]
    act_dim = act_flat.shape[1]
    lat_dim = z_tiled.shape[1]

    # Row tiling: 512-row blocks (multiple of 8 sublanes); pad rows with zeros.
    N = T * B
    tr = _ROW_TILE if N >= _ROW_TILE else _round_up(N, 8)
    n_pad = _round_up(N, tr)
    if n_pad != N:
        pad = n_pad - N
        obs_flat = jnp.pad(obs_flat, ((0, pad), (0, 0)))
        act_flat = jnp.pad(act_flat, ((0, pad), (0, 0)))
        z_tiled = jnp.pad(z_tiled, ((0, pad), (0, 0)))
    grid = (n_pad // tr,)

    n_layers = len(params)

    # --- Prepare weights once (trace time): split layer 0 by input source and
    # --- zero-pad all feature widths to multiples of 128 lanes.
    w0, b0 = params[0]
    w0 = w0.astype(jnp.float32)
    h0 = w0.shape[1]
    h0p = _round_up(h0, _LANE)
    w0p = jnp.pad(w0, ((0, 0), (0, h0p - h0)))
    w0_obs = w0p[:obs_dim]
    w0_act = w0p[obs_dim:obs_dim + act_dim]
    w0_z = w0p[obs_dim + act_dim:]
    b0p = jnp.pad(b0.astype(jnp.float32), (0, h0p - h0)).reshape(1, h0p)

    weight_args = [w0_obs, w0_act, w0_z, b0p]
    prev_w, prev_p = h0, h0p
    for (w, b) in params[1:]:
        w = w.astype(jnp.float32)
        out_d = w.shape[1]
        out_p = _round_up(out_d, _LANE)
        wp = jnp.pad(w, ((0, prev_p - prev_w), (0, out_p - out_d)))
        bp = jnp.pad(b.astype(jnp.float32), (0, out_p - out_d)).reshape(1, out_p)
        weight_args += [wp, bp]
        prev_w, prev_p = out_d, out_p

    # --- Block specs: activations row-tiled; weights/biases resident (constant maps).
    in_specs = [
        pl.BlockSpec((tr, obs_dim), lambda i: (i, 0)),
        pl.BlockSpec((tr, act_dim), lambda i: (i, 0)),
        pl.BlockSpec((tr, lat_dim), lambda i: (i, 0)),
    ]
    for wa in weight_args:
        in_specs.append(pl.BlockSpec(wa.shape, lambda i: (0, 0)))

    out_spec = pl.BlockSpec((tr, 1), lambda i: (i, 0))
    out_shape = jax.ShapeDtypeStruct((n_pad, 1), jnp.float32)

    # Advisory cost estimate for XLA scheduling around the custom call.
    layer_sizes = [obs_dim + act_dim + lat_dim] + [w.shape[1] for (w, _) in params]
    flops = sum(2 * n_pad * a * b for a, b in zip(layer_sizes[:-1], layer_sizes[1:]))
    bytes_accessed = 4 * (n_pad * (obs_dim + act_dim + lat_dim + 1)
                          + sum(int(x.size) for x in weight_args))

    kernel = _make_qmlp_kernel(n_layers)
    out = pl.pallas_call(
        kernel,
        out_shape=out_shape,
        grid=grid,
        in_specs=in_specs,
        out_specs=out_spec,
        compiler_params=pltpu.CompilerParams(
            dimension_semantics=("parallel",),        # row tiles independent; v7x megacore
            vmem_limit_bytes=32 * 1024 * 1024),       # safe on v5e/v6e/v7x budgets
        cost_estimate=pl.CostEstimate(
            flops=flops, transcendentals=0, bytes_accessed=bytes_accessed),
    )(obs_flat, act_flat, z_tiled, *weight_args)

    q = out[:N, 0]                                   # (T*B,)
    if lead_dim == 2:
        q = q.reshape(T, B)
    elif lead_dim == 1:
        q = q.reshape(B)
    else:
        q = q.reshape(())
    return q


def _init_linear(key, fan_in, fan_out):
    # PyTorch-Linear-style init: U(-1/sqrt(fan_in), 1/sqrt(fan_in))
    kw, kb = jax.random.split(key)
    bound = 1.0 / jnp.sqrt(jnp.float32(fan_in))
    W = jax.random.uniform(kw, (fan_in, fan_out), jnp.float32, -bound, bound)
    b = jax.random.uniform(kb, (fan_out,), jnp.float32, -bound, bound)
    return W, b


if __name__ == "__main__":
    # Small, module-consistent shapes.
    observation_shape = (12,)       # obs_ndim = 1
    action_size = 8
    latent_size = 4
    hidden_sizes = [32, 32]
    T, B = 3, 2

    key = jax.random.PRNGKey(0)
    k_obs, k_act, k_z, k_p = jax.random.split(key, 4)

    observation = jax.random.normal(k_obs, (T, B) + observation_shape, jnp.float32)
    action = jax.random.normal(k_act, (T, B, action_size), jnp.float32)
    prev_action = jnp.zeros((T, B, action_size), jnp.float32)   # unused by forward
    prev_reward = jnp.zeros((T, B), jnp.float32)                # unused by forward
    latent_z = jax.random.normal(k_z, (B, latent_size), jnp.float32)

    # MLP params: (obs_dim + action_size + latent_size) -> hidden_sizes... -> 1
    sizes = [int(observation_shape[0]) + action_size + latent_size] + list(hidden_sizes) + [1]
    pkeys = jax.random.split(k_p, len(sizes) - 1)
    params = [_init_linear(pkeys[i], sizes[i], sizes[i + 1]) for i in range(len(sizes) - 1)]

    q = latent_q_of_mu_mlp_forward(
        observation, prev_action, prev_reward, action, latent_z, params,
        obs_ndim=len(observation_shape))
    q = jax.block_until_ready(q)

    # Pure-JAX reference of the same semantics (concat -> MLP -> squeeze -> restore).
    x = jnp.concatenate([observation.reshape(T * B, -1),
                         action.reshape(T * B, -1),
                         jnp.tile(latent_z, (T, 1))], axis=1)
    h = x
    for i, (W, b) in enumerate(params):
        h = jnp.dot(h, W, preferred_element_type=jnp.float32) + b
        if i < len(params) - 1:
            h = jnp.maximum(h, 0.0)
    ref = h[:, 0].reshape(T, B)

    assert q.shape == (T, B), q.shape
    assert jnp.allclose(q, ref, atol=1e-3, rtol=1e-3), "mismatch vs reference"
    print("KERNEL_OK")
</pallas_src>

<mosaic_0001>
module attributes {stable_mosaic.version = 11 : i64} {
  func.func @kernel(%arg0: i32, %arg1: memref<8x12xf32, #tpu.memory_space<vmem>>, %arg2: memref<8x8xf32, #tpu.memory_space<vmem>>, %arg3: memref<8x4xf32, #tpu.memory_space<vmem>>, %arg4: memref<12x128xf32, #tpu.memory_space<vmem>>, %arg5: memref<8x128xf32, #tpu.memory_space<vmem>>, %arg6: memref<4x128xf32, #tpu.memory_space<vmem>>, %arg7: memref<1x128xf32, #tpu.memory_space<vmem>>, %arg8: memref<128x128xf32, #tpu.memory_space<vmem>>, %arg9: memref<1x128xf32, #tpu.memory_space<vmem>>, %arg10: memref<128x128xf32, #tpu.memory_space<vmem>>, %arg11: memref<1x128xf32, #tpu.memory_space<vmem>>, %arg12: memref<8x1xf32, #tpu.memory_space<vmem>>) attributes {dimension_semantics = [#tpu.dimension_semantics<parallel>], iteration_bounds = array<i64: 1>, scalar_prefetch = 0 : i64, scratch_operands = 0 : i64, tpu.core_type = #tpu.core_type<tc>, window_params = [{transform_indices = @transform_0, window_bounds = array<i64: 8, 12>}, {transform_indices = @transform_1, window_bounds = array<i64: 8, 8>}, {transform_indices = @transform_2, window_bounds = array<i64: 8, 4>}, {pipeline_mode = #tpu.pipeline_mode<synchronous>, transform_indices = @transform_3, window_bounds = array<i64: 12, 128>}, {pipeline_mode = #tpu.pipeline_mode<synchronous>, transform_indices = @transform_4, window_bounds = array<i64: 8, 128>}, {pipeline_mode = #tpu.pipeline_mode<synchronous>, transform_indices = @transform_5, window_bounds = array<i64: 4, 128>}, {pipeline_mode = #tpu.pipeline_mode<synchronous>, transform_indices = @transform_6, window_bounds = array<i64: 1, 128>}, {pipeline_mode = #tpu.pipeline_mode<synchronous>, transform_indices = @transform_7, window_bounds = array<i64: 128, 128>}, {pipeline_mode = #tpu.pipeline_mode<synchronous>, transform_indices = @transform_8, window_bounds = array<i64: 1, 128>}, {pipeline_mode = #tpu.pipeline_mode<synchronous>, transform_indices = @transform_9, window_bounds = array<i64: 128, 128>}, {pipeline_mode = #tpu.pipeline_mode<synchronous>, transform_indices = @transform_10, window_bounds = array<i64: 1, 128>}, {transform_indices = @transform_11, window_bounds = array<i64: 8, 1>}]} {
    %c0 = arith.constant 0 : index
    %c0_0 = arith.constant 0 : index
    %0 = vector.load %arg1[%c0, %c0_0] : memref<8x12xf32, #tpu.memory_space<vmem>>, vector<8x12xf32>
    %c0_1 = arith.constant 0 : index
    %c0_2 = arith.constant 0 : index
    %1 = vector.load %arg4[%c0_1, %c0_2] : memref<12x128xf32, #tpu.memory_space<vmem>>, vector<12x128xf32>
    %cst = arith.constant dense<0.000000e+00> : vector<8x128xf32>
    %2 = tpu.matmul %0, %1, %cst {dimension_numbers = #tpu.dot_dimension_numbers<[1], [0], [0], [1], [0, 0, 1, 1], [], []>} : vector<8x12xf32>, vector<12x128xf32>, vector<8x128xf32> -> vector<8x128xf32>
    %c0_3 = arith.constant 0 : index
    %c0_4 = arith.constant 0 : index
    %3 = vector.load %arg2[%c0_3, %c0_4] : memref<8x8xf32, #tpu.memory_space<vmem>>, vector<8x8xf32>
    %c0_5 = arith.constant 0 : index
    %c0_6 = arith.constant 0 : index
    %4 = vector.load %arg5[%c0_5, %c0_6] : memref<8x128xf32, #tpu.memory_space<vmem>>, vector<8x128xf32>
    %cst_7 = arith.constant dense<0.000000e+00> : vector<8x128xf32>
    %5 = tpu.matmul %3, %4, %cst_7 {dimension_numbers = #tpu.dot_dimension_numbers<[1], [0], [0], [1], [0, 0, 1, 1], [], []>} : vector<8x8xf32>, vector<8x128xf32>, vector<8x128xf32> -> vector<8x128xf32>
    %6 = arith.addf %2, %5 : vector<8x128xf32>
    %c0_8 = arith.constant 0 : index
    %c0_9 = arith.constant 0 : index
    %7 = vector.load %arg3[%c0_8, %c0_9] : memref<8x4xf32, #tpu.memory_space<vmem>>, vector<8x4xf32>
    %c0_10 = arith.constant 0 : index
    %c0_11 = arith.constant 0 : index
    %8 = vector.load %arg6[%c0_10, %c0_11] : memref<4x128xf32, #tpu.memory_space<vmem>>, vector<4x128xf32>
    %cst_12 = arith.constant dense<0.000000e+00> : vector<8x128xf32>
    %9 = tpu.matmul %7, %8, %cst_12 {dimension_numbers = #tpu.dot_dimension_numbers<[1], [0], [0], [1], [0, 0, 1, 1], [], []>} : vector<8x4xf32>, vector<4x128xf32>, vector<8x128xf32> -> vector<8x128xf32>
    %10 = arith.addf %6, %9 : vector<8x128xf32>
    %c0_13 = arith.constant 0 : index
    %c0_14 = arith.constant 0 : index
    %11 = vector.load %arg7[%c0_13, %c0_14] : memref<1x128xf32, #tpu.memory_space<vmem>>, vector<1x128xf32>
    %12 = vector.broadcast %11 : vector<1x128xf32> to vector<8x128xf32>
    %13 = arith.addf %10, %12 : vector<8x128xf32>
    %cst_15 = arith.constant 0.000000e+00 : f32
    %14 = vector.broadcast %cst_15 : f32 to vector<8x128xf32>
    %15 = arith.maximumf %13, %14 : vector<8x128xf32>
    %c0_16 = arith.constant 0 : index
    %c0_17 = arith.constant 0 : index
    %16 = vector.load %arg8[%c0_16, %c0_17] : memref<128x128xf32, #tpu.memory_space<vmem>>, vector<128x128xf32>
    %cst_18 = arith.constant dense<0.000000e+00> : vector<8x128xf32>
    %17 = tpu.matmul %15, %16, %cst_18 {dimension_numbers = #tpu.dot_dimension_numbers<[1], [0], [0], [1], [0, 0, 1, 1], [], []>} : vector<8x128xf32>, vector<128x128xf32>, vector<8x128xf32> -> vector<8x128xf32>
    %c0_19 = arith.constant 0 : index
    %c0_20 = arith.constant 0 : index
    %18 = vector.load %arg9[%c0_19, %c0_20] : memref<1x128xf32, #tpu.memory_space<vmem>>, vector<1x128xf32>
    %19 = vector.broadcast %18 : vector<1x128xf32> to vector<8x128xf32>
    %20 = arith.addf %17, %19 : vector<8x128xf32>
    %cst_21 = arith.constant 0.000000e+00 : f32
    %21 = vector.broadcast %cst_21 : f32 to vector<8x128xf32>
    %22 = arith.maximumf %20, %21 : vector<8x128xf32>
    %c0_22 = arith.constant 0 : index
    %c0_23 = arith.constant 0 : index
    %23 = vector.load %arg10[%c0_22, %c0_23] : memref<128x128xf32, #tpu.memory_space<vmem>>, vector<128x128xf32>
    %cst_24 = arith.constant dense<0.000000e+00> : vector<8x128xf32>
    %24 = tpu.matmul %22, %23, %cst_24 {dimension_numbers = #tpu.dot_dimension_numbers<[1], [0], [0], [1], [0, 0, 1, 1], [], []>} : vector<8x128xf32>, vector<128x128xf32>, vector<8x128xf32> -> vector<8x128xf32>
    %c0_25 = arith.constant 0 : index
    %c0_26 = arith.constant 0 : index
    %25 = vector.load %arg11[%c0_25, %c0_26] : memref<1x128xf32, #tpu.memory_space<vmem>>, vector<1x128xf32>
    %26 = vector.broadcast %25 : vector<1x128xf32> to vector<8x128xf32>
    %27 = arith.addf %24, %26 : vector<8x128xf32>
    %28 = vector.extract_strided_slice %27 {offsets = [0, 0], sizes = [8, 1], strides = [1, 1]} : vector<8x128xf32> to vector<8x1xf32>
    %c0_27 = arith.constant 0 : index
    %c0_28 = arith.constant 0 : index
    %29 = vector.load %arg12[%c0_27, %c0_28] : memref<8x1xf32, #tpu.memory_space<vmem>>, vector<8x1xf32>
    tpu.vector_store %arg12[%c0_27, %c0_28], %28 {strides = array<i32>} : memref<8x1xf32, #tpu.memory_space<vmem>>, vector<8x1xf32>,
    return
  }
  func.func @transform_0(%arg0: i32) -> (i32, i32) {
    %c0_i32 = arith.constant 0 : i32
    %c0_i32_0 = arith.constant 0 : i32
    return %arg0, %c0_i32 : i32, i32
  }
  func.func @transform_1(%arg0: i32) -> (i32, i32) {
    %c0_i32 = arith.constant 0 : i32
    %c0_i32_0 = arith.constant 0 : i32
    return %arg0, %c0_i32 : i32, i32
  }
  func.func @transform_2(%arg0: i32) -> (i32, i32) {
    %c0_i32 = arith.constant 0 : i32
    %c0_i32_0 = arith.constant 0 : i32
    return %arg0, %c0_i32 : i32, i32
  }
  func.func @transform_3(%arg0: i32) -> (i32, i32) {
    %c0_i32 = arith.constant 0 : i32
    %c0_i32_0 = arith.constant 0 : i32
    %c0_i32_1 = arith.constant 0 : i32
    return %c0_i32, %c0_i32_0 : i32, i32
  }
  func.func @transform_4(%arg0: i32) -> (i32, i32) {
    %c0_i32 = arith.constant 0 : i32
    %c0_i32_0 = arith.constant 0 : i32
    %c0_i32_1 = arith.constant 0 : i32
    return %c0_i32, %c0_i32_0 : i32, i32
  }
  func.func @transform_5(%arg0: i32) -> (i32, i32) {
    %c0_i32 = arith.constant 0 : i32
    %c0_i32_0 = arith.constant 0 : i32
    %c0_i32_1 = arith.constant 0 : i32
    return %c0_i32, %c0_i32_0 : i32, i32
  }
  func.func @transform_6(%arg0: i32) -> (i32, i32) {
    %c0_i32 = arith.constant 0 : i32
    %c0_i32_0 = arith.constant 0 : i32
    %c0_i32_1 = arith.constant 0 : i32
    return %c0_i32, %c0_i32_0 : i32, i32
  }
  func.func @transform_7(%arg0: i32) -> (i32, i32) {
    %c0_i32 = arith.constant 0 : i32
    %c0_i32_0 = arith.constant 0 : i32
    %c0_i32_1 = arith.constant 0 : i32
    return %c0_i32, %c0_i32_0 : i32, i32
  }
  func.func @transform_8(%arg0: i32) -> (i32, i32) {
    %c0_i32 = arith.constant 0 : i32
    %c0_i32_0 = arith.constant 0 : i32
    %c0_i32_1 = arith.constant 0 : i32
    return %c0_i32, %c0_i32_0 : i32, i32
  }
  func.func @transform_9(%arg0: i32) -> (i32, i32) {
    %c0_i32 = arith.constant 0 : i32
    %c0_i32_0 = arith.constant 0 : i32
    %c0_i32_1 = arith.constant 0 : i32
    return %c0_i32, %c0_i32_0 : i32, i32
  }
  func.func @transform_10(%arg0: i32) -> (i32, i32) {
    %c0_i32 = arith.constant 0 : i32
    %c0_i32_0 = arith.constant 0 : i32
    %c0_i32_1 = arith.constant 0 : i32
    return %c0_i32, %c0_i32_0 : i32, i32
  }
  func.func @transform_11(%arg0: i32) -> (i32, i32) {
    %c0_i32 = arith.constant 0 : i32
    %c0_i32_0 = arith.constant 0 : i32
    return %arg0, %c0_i32 : i32, i32
  }
}

</mosaic_0001>

<bundles_post_ra>
// kernel: tpu_custom_call.1
= control target key start
LH: loop header
LB: loop body
LE: loop exit
PB: predicated region body
PF: predicated region fallthrough
CT: control target
= control target key end

     0   :  { %16 = vsyncpa [#allocation3], 0  ;;  %s539_s0 = inlined_call_operand.vmem [shape: f32[8,12], index: 0, kind: input, shape index: {}]   ;;  %s540_s1 = inlined_call_operand.hbm [shape: f32[8,8], index: 1, kind: input, shape index: {}]   ;;  %s541_s2 = inlined_call_operand.vmem [shape: f32[8,4], index: 2, kind: input, shape index: {}]   ;;  %s542_s3 = inlined_call_operand.hbm [shape: f32[12,128], index: 3, kind: input, shape index: {}]   ;;  %s543_s4 = inlined_call_operand.hbm [shape: f32[8,128], index: 4, kind: input, shape index: {}]   ;;  %s544_s5 = inlined_call_operand.vmem [shape: f32[4,128], index: 5, kind: input, shape index: {}]   ;;  %s545_s6 = inlined_call_operand.vmem [shape: f32[1,128], index: 6, kind: input, shape index: {}]   ;;  %s546_s7 = inlined_call_operand.hbm [shape: f32[128,128], index: 7, kind: input, shape index: {}]   ;;  %s547_s8 = inlined_call_operand.vmem [shape: f32[1,128], index: 8, kind: input, shape index: {}]   ;;  %s548_s9 = inlined_call_operand.hbm [shape: f32[128,128], index: 9, kind: input, shape index: {}]   ;;  %s549_s10 = inlined_call_operand.vmem [shape: f32[1,128], index: 10, kind: input, shape index: {}]   ;;  %s550_s11 = inlined_call_operand.vmem [shape: f32[8,1], index: 11, kind: output, shape index: {}]  }
   0x1   :  { %17 = vsyncpa [#allocation5], 0  ;;  %s38_s19 = sshll.u32 %s542_s3, 4  ;;  %s39_s19 = int_to_ptr.hbm [resolvable:$true] %s38_s19 }
   0x2   :  { %18 = vsyncpa [#allocation8], 0  ;;  %s436_s20 = smov [#allocation4]   ;;  %s66_s24 = sshll.u32 %s546_s7, 4  ;;  %s67_s24 = int_to_ptr.hbm [resolvable:$true] %s66_s24 }
   0x3   :  { %s40_s21 = sshll.u32 %s436_s20, 4  ;;  %s437_s25 = smov 128   ;;  %s41_s21 = int_to_ptr.vmem [resolvable:$true] %s40_s21 }
   0x4   :  { %s438_s26 = smov 8   ;;  %s439_s27 = smov [#allocation7]  }
   0x5   :  { %46 = dma.hbm_to_vmem [thread:$0]  %s39_s19, 256, %s41_s21, [#allocation5], %s437_s25, %s437_s25, %s438_s26  }
   0x6   :  { %s68_s28 = sshll.u32 %s439_s27, 4  ;;  %s26_s12 = sshll.u32 %s540_s1, 4  ;;  %s69_s28 = int_to_ptr.vmem [resolvable:$true] %s68_s28  ;;  %s27_s12 = int_to_ptr.hbm [resolvable:$true] %s26_s12 }
   0x7   :  { %74 = dma.hbm_to_vmem [thread:$0]  %s67_s24, 2048, %s69_s28, [#allocation8], %s437_s25, %s437_s25, %s438_s26  }
   0x8   :  { %s52_s14 = sshll.u32 %s543_s4, 4  ;;  %s440_s15 = smov [#allocation2]   ;;  %s53_s14 = int_to_ptr.hbm [resolvable:$true] %s52_s14 }
   0x9   :  { %s28_s16 = sshll.u32 %s440_s15, 4  ;;  %s441_s7 = smov [#allocation6]   ;;  %s29_s16 = int_to_ptr.vmem [resolvable:$true] %s28_s16 }
   0xa   :  { %31 = dma.hbm_to_vmem [thread:$0]  %s27_s12, 128, %s29_s16, [#allocation3]  }
   0xb   :  { %s54_s17 = sshll.u32 %s441_s7, 4  ;;  %s81_s20 = sshll.u32 %s548_s9, 4  ;;  %s55_s17 = int_to_ptr.vmem [resolvable:$true] %s54_s17  ;;  %s82_s20 = int_to_ptr.hbm [resolvable:$true] %s81_s20 }
   0xc   :  { %57 = dma.hbm_to_vmem [thread:$0]  %s53_s14, 128, %s55_s17, [#allocation5]  }
   0xd   :  { %s442_s1 = smov [#allocation9]  }
   0xe   :  { %s83_s21 = sshll.u32 %s442_s1, 4  ;;  %s84_s21 = int_to_ptr.vmem [resolvable:$true] %s83_s21 }
   0xf   :  { %89 = dma.hbm_to_vmem [thread:$0]  %s82_s20, 2048, %s84_s21, [#allocation8], %s437_s25, %s437_s25, %s438_s26  }
  0x10   :  { %430 = dma.done.wait [#allocation3], 128  }
  0x11   :  { %431 = vsyncadd [#allocation3], 4294967168 }
  0x12   :  { %432 = dma.done.wait [#allocation5], 384  }
  0x13   :  { %433 = vsyncadd [#allocation5], 4294966912 }
  0x14   :  { %434 = dma.done.wait [#allocation8], 4096  }
  0x15   :  { %435 = vsyncadd [#allocation8], 4294963200  ;;  %vm117_vm0 = vcmask 64512   ;;  %vm145_vm1 = vcmask 1043456   ;;  %v116_v0 = vld [vmem:[#allocation6] sm:$0xff]  ;;  %v115_v1 = vld [vmem:[#allocation2] sm:$0xff] }
  0x16   :  { %v170_v2 = vld [vmem:[%s544_s5] sm:$0xf]  ;;  %136 = vmatpush.msra.mxu2 %v116_v0  ;;  %v114_v3 = vld [vmem:[#allocation4 + $0x8] sm:$0xf]  ;;  %v113_v4 = vld [vmem:[#allocation4] sm:$0xff]  ;;  %vm141_vm2 = vcmask 97280  }
  0x17   :  { %295 = vmatmul.msk.f32.vlgmr.msra.gmra.mxu2 %vm117_vm0, %v115_v1  ;;  %296 = vmatpush.msk.msra.mxu1 %vm145_vm1, %v114_v3  ;;  %v112_v5 = vld [vmem:[%s539_s0] sm:$0xff]  ;;  %v220_v6 = vld [vmem:[#allocation7 + $0x78] sm:$0xff]  ;;  %v219_v7 = vld [vmem:[#allocation7 + $0x70] sm:$0xff]  ;;  %vm171_vm3 = vcmask 31744   ;;  %vm286_vm4 = vcmask 7168  }
  0x18   :  { %298 = vmatpush.msk.msrb.mxu2 %vm145_vm1, %v170_v2  ;;  %225 = vmatpush.msra.mxu3 %v220_v6  ;;  %v218_v8 = vld [vmem:[#allocation7 + $0x68] sm:$0xff]  ;;  %v217_v9 = vld [vmem:[#allocation7 + $0x60] sm:$0xff]  ;;  %v216_v11 = vld [vmem:[#allocation7 + $0x58] sm:$0xff] }
  0x19   :  { %164 = vmatpush.msra.mxu1 %v113_v4  ;;  %v169_v10 = vld [vmem:[%s541_s2] sm:$0xff]  ;;  %v215_v12 = vld [vmem:[#allocation7 + $0x50] sm:$0xff]  ;;  %v214_v13 = vld [vmem:[#allocation7 + $0x48] sm:$0xff] }
  0x1a   :  { %297 = vmatmul.msk.f32.vlgmr.msra.gmra.mxu1 %vm141_vm2, %v112_v5  ;;  %226 = vmatpush.msra.mxu3 %v219_v7  ;;  %v213_v14 = vld [vmem:[#allocation7 + $0x40] sm:$0xff]  ;;  %v212_v15 = vld [vmem:[#allocation7 + $0x38] sm:$0xff]  ;;  %v211_v16 = vld [vmem:[#allocation7 + $0x30] sm:$0xff] }
  0x1b   :  { %v210_v17 = vld [vmem:[#allocation7 + $0x28] sm:$0xff]  ;;  %v209_v18 = vld [vmem:[#allocation7 + $0x20] sm:$0xff]  ;;  %v208_v19 = vld [vmem:[#allocation7 + $0x18] sm:$0xff] }
  0x1c   :  { %227 = vmatpush.msra.mxu3 %v218_v8  ;;  %v207_v20 = vld [vmem:[#allocation7 + $0x10] sm:$0xff]  ;;  %v206_v21 = vld [vmem:[#allocation7 + $0x8] sm:$0xff]  ;;  %v205_v22 = vld [vmem:[#allocation7] sm:$0xff] }
  0x1d   :  { %v261_v23 = vld [vmem:[#allocation9 + $0x78] sm:$0xff]  ;;  %v260_v24 = vld [vmem:[#allocation9 + $0x70] sm:$0xff]  ;;  %v259_v25 = vld [vmem:[#allocation9 + $0x68] sm:$0xff] }
  0x1e   :  { %228 = vmatpush.msra.mxu3 %v217_v9  ;;  %266 = vmatpush.msra.mxu0 %v261_v23  ;;  %v258_v26 = vld [vmem:[#allocation9 + $0x60] sm:$0xff]  ;;  %v257_v27 = vld [vmem:[#allocation9 + $0x58] sm:$0xff]  ;;  %v256_v28 = vld [vmem:[#allocation9 + $0x50] sm:$0xff] }
  0x1f   :  { %299 = vmatmul.msk.f32.vlgmr.msrb.gmra.mxu2 %vm171_vm3, %v169_v10  ;;  %v255_v29 = vld [vmem:[#allocation9 + $0x48] sm:$0xff]  ;;  %v254_v30 = vld [vmem:[#allocation9 + $0x40] sm:$0xff]  ;;  %v253_v31 = vld [vmem:[#allocation9 + $0x38] sm:$0xff] }
  0x20   :  { %229 = vmatpush.msra.mxu3 %v216_v11  ;;  %267 = vmatpush.msra.mxu0 %v260_v24  ;;  %v252_v32 = vld [vmem:[#allocation9 + $0x30] sm:$0xff]  ;;  %v251_v34 = vld [vmem:[#allocation9 + $0x28] sm:$0xff]  ;;  %v250_v35 = vld [vmem:[#allocation9 + $0x20] sm:$0xff] }
  0x21   :  { %v249_v37 = vld [vmem:[#allocation9 + $0x18] sm:$0xff]  ;;  %v307_v39 = vld [vmem:[%s545_s6] ss:$0 sm:$0xff]  ;;  %v248_v44 = vld [vmem:[#allocation9 + $0x10] sm:$0xff] }
  0x22   :  { %230 = vmatpush.msra.mxu3 %v215_v12  ;;  %268 = vmatpush.msra.mxu0 %v259_v25  ;;  %v247_v45 = vld [vmem:[#allocation9 + $0x8] sm:$0xff]  ;;  %v246_v46 = vld [vmem:[#allocation9] sm:$0xff] }
  0x23   :  { %v308_v47 = vld [vmem:[%s547_s8] ss:$0 sm:$0xff] }
  0x24   :  { %231 = vmatpush.msra.mxu3 %v214_v13  ;;  %269 = vmatpush.msra.mxu0 %v258_v26  ;;  %v309_v51 = vld [vmem:[%s549_s10] ss:$0 sm:$0xff] }
  0x26   :  { %232 = vmatpush.msra.mxu3 %v213_v14  ;;  %270 = vmatpush.msra.mxu0 %v257_v27 }
  0x28   :  { %233 = vmatpush.msra.mxu3 %v212_v15  ;;  %271 = vmatpush.msra.mxu0 %v256_v28 }
  0x2a   :  { %234 = vmatpush.msra.mxu3 %v211_v16  ;;  %272 = vmatpush.msra.mxu0 %v255_v29 }
  0x2c   :  { %235 = vmatpush.msra.mxu3 %v210_v17  ;;  %273 = vmatpush.msra.mxu0 %v254_v30 }
  0x2e   :  { %236 = vmatpush.msra.mxu3 %v209_v18  ;;  %274 = vmatpush.msra.mxu0 %v253_v31 }
  0x30   :  { %237 = vmatpush.msra.mxu3 %v208_v19  ;;  %275 = vmatpush.msra.mxu0 %v252_v32 }
  0x32   :  { %238 = vmatpush.msra.mxu3 %v207_v20  ;;  %276 = vmatpush.msra.mxu0 %v251_v34 }
  0x34   :  { %239 = vmatpush.msra.mxu3 %v206_v21  ;;  %277 = vmatpush.msra.mxu0 %v250_v35 }
  0x36   :  { %240 = vmatpush.msra.mxu3 %v205_v22  ;;  %278 = vmatpush.msra.mxu0 %v249_v37 }
  0x38   :  { %279 = vmatpush.msra.mxu0 %v248_v44 }
  0x3a   :  { %280 = vmatpush.msra.mxu0 %v247_v45 }
  0x3c   :  { %281 = vmatpush.msra.mxu0 %v246_v46 }
  0x97   :  { %v166_v36 = vpop.f32.mrf.mxu1 }
  0x9a   :  { %v138_v33 = vpop.f32.mrf.mxu2 }
  0x9b   :  { %v167_v38 = vadd.f32 %v166_v36, %v138_v33 }
  0xa2   :  { %v195_v40 = vpop.f32.mrf.mxu2 }
  0xa3   :  { %v198_v41 = vadd.f32 %v195_v40, %v167_v38 }
  0xa5   :  { %v203_v42 = vadd.f32 %v307_v39, %v198_v41 }
  0xa7   :  { %v204_v43 = vmax.f32 %v203_v42, 0.0 }
  0xa9   :  { %241 = vmatmul.f32.vlgmr.msra.gmra.mxu3 %v204_v43 }
 0x12c   :  { %v242_v48 = vpop.f32.mrf.mxu3 }
 0x12d   :  { %v243_v49 = vadd.f32 %v308_v47, %v242_v48 }
 0x12f   :  { %v245_v50 = vmax.f32 %v243_v49, 0.0 }
 0x131   :  { %282 = vmatmul.f32.vlgmr.msra.gmra.mxu0 %v245_v50 }
 0x1ae   :  { %v283_v52 = vpop.f32.mrf.mxu0 }
 0x1af   :  { %v284_v53 = vadd.f32 %v309_v51, %v283_v52 }
 0x1b1   :  { %287 = vst.msk [vmem:[%s550_s11] sm:$0xff] %vm286_vm4, %v284_v53 }
 0x1b2   :  { %292 = vsyncpa [#allocation3], 1 }
 0x1b3   :  { %293 = vsyncpa [#allocation5], 1 }
 0x1b4   :  { %294 = vsyncpa [#allocation8], 1 }

</bundles_post_ra>
